<compile_context>
chip_gen: v7x
topology: tpu7x:2x2x1
jax: 0.10.0
libtpu: 0.0.40
codegen_flags: <defaults>
</compile_context>

<pallas_src>
import functools

import jax
import jax.numpy as jnp
from jax.experimental import pallas as pl
from jax.experimental.pallas import tpu as pltpu


_VMEM_BUDGET = 40 << 20  # conservative: v7x has only 64 MiB VMEM per TensorCore


def _accent_kernel(x_ref, w1t_ref, b1_ref, w2_ref, b2_ref, o_ref, *, compute_dtype):
    """One batch tile, x kept in its native [B, D] layout.

    x_ref  : (bb, D)  input block (streams over the grid)
    w1t_ref: (D, H)   fc1 weight, pre-transposed, VMEM-resident across grid
    b1_ref : (1, H)   fc1 bias row (resident)
    w2_ref : (1, H)   fc2 weight row (resident)
    b2_ref : (1,)     fc2 bias scalar (SMEM)
    o_ref  : (bb, 1)  sigmoid(fc2(relu(fc1(x)))) for this tile
    """
    x = x_ref[...]
    if x.dtype != compute_dtype:
        # In-kernel VPU cast (e.g. f32 -> bf16 MXU operands); avoids the extra
        # wrapper-side HBM read+write pass a pre-cast would cost.
        x = x.astype(compute_dtype)
    # fc1 on the MXU: (bb, D) @ (D, H) -> (bb, H), f32 accumulator.
    h = jnp.dot(x, w1t_ref[...], preferred_element_type=jnp.float32)
    h = jnp.maximum(h + b1_ref[...], 0.0)                      # bias + ReLU (VPU)
    # fc2 (H -> 1) as VPU mul + XLU lane reduction; logit is a (bb, 1) column.
    logit = jnp.sum(h * w2_ref[...], axis=-1, keepdims=True) + b2_ref[0]
    o_ref[...] = jax.nn.sigmoid(logit).astype(o_ref.dtype)     # EUP


def _round_up(a, m):
    return (a + m - 1) // m * m


def _auto_block_b(D, H, x_isz, w_isz):
    """Largest batch tile (multiple of 128) that (a) fits a v7x-safe VMEM
    budget including the hidden intermediate and (b) gives an x tile of
    roughly 2 MiB so per-step DMA time dominates the grid-step overhead."""
    resident = 2 * (D * H * w_isz + 2 * H * 4)          # weights/biases, 2 bufs each
    per_row = 2 * D * x_isz + 2 * 4 + 2 * H * 4         # x + out (dbl-buf) + h (2x slack)
    bb_budget = max((_VMEM_BUDGET - resident) // max(per_row, 1), 128)
    bb_target = max((2 << 20) // max(D * x_isz, 1), 1024)   # ~2 MiB x tile
    bb = min(bb_budget, bb_target, 16384)
    return max(int(bb) // 128 * 128, 128)


def accent_discriminator(x, w1, b1, w2, b2, *, block_b=None, use_bf16=False,
                         interpret=False):
    """Forward pass of AccentDiscriminator.

    x : [B, input_dim]            (same layout a torch caller would pass)
    w1: [hidden_dim, input_dim]   (== fc1.weight, torch layout)
    b1: [hidden_dim]              (== fc1.bias)
    w2: [hidden_dim]              (== fc2.weight.squeeze(0))
    b2: [1]                       (== fc2.bias)
    returns: [B, 1] float32 probabilities.
    """
    x = jnp.asarray(x)
    B, D = x.shape
    H = w1.shape[0]
    assert w1.shape == (H, D)

    x_isz = jnp.dtype(x.dtype).itemsize
    compute_dtype = jnp.bfloat16 if use_bf16 else jnp.float32
    w_isz = jnp.dtype(compute_dtype).itemsize

    if block_b is None:
        block_b = _auto_block_b(D, H, x_isz, w_isz)

    # Block layout: >= 2 blocks once B is large enough so the "parallel" batch
    # axis can actually be sharded across both TensorCores on v7x; block sizes
    # are evened out (and rounded to 128) to keep padding small.
    nb = pl.cdiv(B, block_b)
    if B >= 256:
        nb = max(nb, 2)
    if nb > 1:
        bb = _round_up(pl.cdiv(B, nb), 128)
        nb = pl.cdiv(B, bb)
    else:
        bb = B
    Bp = nb * bb
    if Bp != B:
        x = jnp.pad(x, ((0, Bp - B), (0, 0)))   # zero rows, sliced off below

    # Weight prep is H*D elements -- negligible next to streaming x once.
    w1t = jnp.asarray(w1, compute_dtype).T                     # (D, H)
    b1k = jnp.asarray(b1, jnp.float32).reshape(1, H)
    w2k = jnp.asarray(w2, jnp.float32).reshape(1, H)
    b2k = jnp.asarray(b2, jnp.float32).reshape(1)              # -> SMEM

    # VMEM accounting: double-buffered x/out tiles, double-buffered resident
    # weight blocks, plus the (bb, H) f32 hidden intermediate (2x slack).
    need = (2 * bb * D * x_isz                # x tile, double-buffered
            + 2 * bb * 4                      # output tile, double-buffered
            + 2 * (D * H * w_isz + 2 * H * 4)  # resident weights/biases (2 bufs)
            + 2 * bb * H * 4)                 # hidden intermediate + temporaries
    vmem_limit = int(min(max(need + (4 << 20), 8 << 20), 48 << 20))

    vmem = pltpu.MemorySpace.VMEM
    smem = pltpu.MemorySpace.SMEM
    kernel = functools.partial(_accent_kernel, compute_dtype=compute_dtype)
    out = pl.pallas_call(
        kernel,
        out_shape=jax.ShapeDtypeStruct((Bp, 1), jnp.float32),
        grid=(nb,),
        in_specs=[
            pl.BlockSpec((bb, D), lambda i: (i, 0), memory_space=vmem),   # x tile
            pl.BlockSpec((D, H), lambda i: (0, 0), memory_space=vmem),    # fc1 W^T (resident)
            pl.BlockSpec((1, H), lambda i: (0, 0), memory_space=vmem),    # fc1 b (resident)
            pl.BlockSpec((1, H), lambda i: (0, 0), memory_space=vmem),    # fc2 w (resident)
            pl.BlockSpec(memory_space=smem),                              # fc2 b (scalar)
        ],
        out_specs=pl.BlockSpec((bb, 1), lambda i: (i, 0), memory_space=vmem),
        compiler_params=pltpu.CompilerParams(
            dimension_semantics=("parallel",),
            vmem_limit_bytes=vmem_limit,
        ),
        interpret=interpret,
    )(x, w1t, b1k, w2k, b2k)

    # Module output is a [B, 1] column of probabilities.
    return out[:B]


if __name__ == "__main__":
    key = jax.random.PRNGKey(0)
    kx, k1, k2, k3, k4 = jax.random.split(key, 5)

    input_dim, hidden_dim = 32, 64
    bound1 = 1.0 / (input_dim ** 0.5)
    bound2 = 1.0 / (hidden_dim ** 0.5)
    # nn.Linear-style init, stored in torch layouts (w1: [H, D]).
    w1 = jax.random.uniform(k1, (hidden_dim, input_dim), jnp.float32, -bound1, bound1)
    b1 = jax.random.uniform(k2, (hidden_dim,), jnp.float32, -bound1, bound1)
    w2 = jax.random.uniform(k3, (hidden_dim,), jnp.float32, -bound2, bound2)
    b2 = jax.random.uniform(k4, (1,), jnp.float32, -bound2, bound2)

    def reference(x):
        h = jnp.maximum(x @ w1.T + b1, 0.0)
        return jax.nn.sigmoid(h @ w2[:, None] + b2)

    fwd = jax.jit(accent_discriminator,
                  static_argnames=("block_b", "use_bf16", "interpret"))

    # Case 1: tiny batch -> single full-array tile (grid of 1).
    x_small = jax.random.normal(kx, (8, input_dim), jnp.float32)
    out = jax.block_until_ready(fwd(x_small, w1, b1, w2, b2))
    assert out.shape == (8, 1)
    assert jnp.allclose(out, reference(x_small), atol=1e-4, rtol=1e-4)

    # Case 2: auto tiling -> two 256-row blocks (dual-TC path on v7x),
    # ragged batch of 300 zero-padded and sliced back.
    x_mid = jax.random.normal(kx, (300, input_dim), jnp.float32)
    out = jax.block_until_ready(fwd(x_mid, w1, b1, w2, b2))
    assert out.shape == (300, 1)
    assert jnp.allclose(out, reference(x_mid), atol=1e-4, rtol=1e-4)

    # Case 3: explicit small block_b -> multi-step streaming path (3 x 128).
    out = jax.block_until_ready(fwd(x_mid, w1, b1, w2, b2, block_b=128))
    assert out.shape == (300, 1)
    assert jnp.allclose(out, reference(x_mid), atol=1e-4, rtol=1e-4)

    # Case 4: bf16 MXU operands via in-kernel cast; f32 accumulate/activations.
    out_bf16 = jax.block_until_ready(fwd(x_mid, w1, b1, w2, b2, use_bf16=True))
    assert out_bf16.shape == (300, 1)
    assert jnp.allclose(out_bf16, reference(x_mid), atol=5e-2, rtol=5e-2)

    print("KERNEL_OK")
</pallas_src>

<mosaic_0001>
module attributes {stable_mosaic.version = 11 : i64} {
  func.func @_accent_kernel(%arg0: i32, %arg1: memref<8x32xf32, #tpu.memory_space<vmem>>, %arg2: memref<32x64xf32, #tpu.memory_space<vmem>>, %arg3: memref<1x64xf32, #tpu.memory_space<vmem>>, %arg4: memref<1x64xf32, #tpu.memory_space<vmem>>, %arg5: memref<1xf32, #tpu.memory_space<smem>>, %arg6: memref<8x1xf32, #tpu.memory_space<vmem>>) attributes {dimension_semantics = [#tpu.dimension_semantics<parallel>], iteration_bounds = array<i64: 1>, scalar_prefetch = 0 : i64, scratch_operands = 0 : i64, tpu.core_type = #tpu.core_type<tc>, window_params = [{transform_indices = @transform_0, window_bounds = array<i64: 8, 32>}, {pipeline_mode = #tpu.pipeline_mode<synchronous>, transform_indices = @transform_1, window_bounds = array<i64: 32, 64>}, {pipeline_mode = #tpu.pipeline_mode<synchronous>, transform_indices = @transform_2, window_bounds = array<i64: 1, 64>}, {pipeline_mode = #tpu.pipeline_mode<synchronous>, transform_indices = @transform_3, window_bounds = array<i64: 1, 64>}, {transform_indices = @transform_4, window_bounds = array<i64: 1>}, {transform_indices = @transform_5, window_bounds = array<i64: 8, 1>}]} {
    %c0 = arith.constant 0 : index
    %c0_0 = arith.constant 0 : index
    %0 = vector.load %arg1[%c0, %c0_0] : memref<8x32xf32, #tpu.memory_space<vmem>>, vector<8x32xf32>
    %c0_1 = arith.constant 0 : index
    %c0_2 = arith.constant 0 : index
    %1 = vector.load %arg2[%c0_1, %c0_2] : memref<32x64xf32, #tpu.memory_space<vmem>>, vector<32x64xf32>
    %cst = arith.constant dense<0.000000e+00> : vector<8x64xf32>
    %2 = tpu.matmul %0, %1, %cst {dimension_numbers = #tpu.dot_dimension_numbers<[1], [0], [0], [1], [0, 0, 1, 1], [], []>} : vector<8x32xf32>, vector<32x64xf32>, vector<8x64xf32> -> vector<8x64xf32>
    %c0_3 = arith.constant 0 : index
    %c0_4 = arith.constant 0 : index
    %3 = vector.load %arg3[%c0_3, %c0_4] : memref<1x64xf32, #tpu.memory_space<vmem>>, vector<1x64xf32>
    %4 = vector.broadcast %3 : vector<1x64xf32> to vector<8x64xf32>
    %5 = arith.addf %2, %4 : vector<8x64xf32>
    %cst_5 = arith.constant 0.000000e+00 : f32
    %6 = vector.broadcast %cst_5 : f32 to vector<8x64xf32>
    %7 = arith.maximumf %5, %6 : vector<8x64xf32>
    %c0_6 = arith.constant 0 : index
    %c0_7 = arith.constant 0 : index
    %8 = vector.load %arg4[%c0_6, %c0_7] : memref<1x64xf32, #tpu.memory_space<vmem>>, vector<1x64xf32>
    %9 = vector.broadcast %8 : vector<1x64xf32> to vector<8x64xf32>
    %10 = arith.mulf %7, %9 : vector<8x64xf32>
    %cst_8 = arith.constant dense<0.000000e+00> : vector<8xf32>
    %11 = vector.multi_reduction <add>, %10, %cst_8 [1] : vector<8x64xf32> to vector<8xf32>
    %12 = vector.shape_cast %11 : vector<8xf32> to vector<8x1xf32>
    %c0_9 = arith.constant 0 : index
    %13 = memref.load %arg5[%c0_9] : memref<1xf32, #tpu.memory_space<smem>>
    %14 = vector.broadcast %13 : f32 to vector<8x1xf32>
    %15 = arith.addf %12, %14 : vector<8x1xf32>
    %16 = arith.negf %15 : vector<8x1xf32>
    %17 = math.exp %16 : vector<8x1xf32>
    %cst_10 = arith.constant 1.000000e+00 : f32
    %18 = vector.broadcast %cst_10 : f32 to vector<8x1xf32>
    %19 = arith.addf %18, %17 : vector<8x1xf32>
    %20 = arith.divf %18, %19 : vector<8x1xf32>
    %c0_11 = arith.constant 0 : index
    %c0_12 = arith.constant 0 : index
    %21 = vector.load %arg6[%c0_11, %c0_12] : memref<8x1xf32, #tpu.memory_space<vmem>>, vector<8x1xf32>
    tpu.vector_store %arg6[%c0_11, %c0_12], %20 {strides = array<i32>} : memref<8x1xf32, #tpu.memory_space<vmem>>, vector<8x1xf32>,
    return
  }
  func.func @transform_0(%arg0: i32) -> (i32, i32) {
    %c0_i32 = arith.constant 0 : i32
    %c0_i32_0 = arith.constant 0 : i32
    return %arg0, %c0_i32 : i32, i32
  }
  func.func @transform_1(%arg0: i32) -> (i32, i32) {
    %c0_i32 = arith.constant 0 : i32
    %c0_i32_0 = arith.constant 0 : i32
    %c0_i32_1 = arith.constant 0 : i32
    return %c0_i32, %c0_i32_0 : i32, i32
  }
  func.func @transform_2(%arg0: i32) -> (i32, i32) {
    %c0_i32 = arith.constant 0 : i32
    %c0_i32_0 = arith.constant 0 : i32
    %c0_i32_1 = arith.constant 0 : i32
    return %c0_i32, %c0_i32_0 : i32, i32
  }
  func.func @transform_3(%arg0: i32) -> (i32, i32) {
    %c0_i32 = arith.constant 0 : i32
    %c0_i32_0 = arith.constant 0 : i32
    %c0_i32_1 = arith.constant 0 : i32
    return %c0_i32, %c0_i32_0 : i32, i32
  }
  func.func @transform_4(%arg0: i32) -> i32 {
    %c0_i32 = arith.constant 0 : i32
    %c0_i32_0 = arith.constant 0 : i32
    return %c0_i32 : i32
  }
  func.func @transform_5(%arg0: i32) -> (i32, i32) {
    %c0_i32 = arith.constant 0 : i32
    %c0_i32_0 = arith.constant 0 : i32
    return %arg0, %c0_i32 : i32, i32
  }
}

</mosaic_0001>

<bundles_post_ra>
// kernel: accent_discriminator.1
= control target key start
LH: loop header
LB: loop body
LE: loop exit
PB: predicated region body
PF: predicated region fallthrough
CT: control target
= control target key end

     0   :  { %11 = vsyncpa [#allocation4], 0  ;;  %s210_s18 = smov [#allocation3]   ;;  %s273_s0 = inlined_call_operand.vmem [shape: f32[8,32], index: 0, kind: input, shape index: {}]   ;;  %s274_s1 = inlined_call_operand.hbm [shape: f32[32,64], index: 1, kind: input, shape index: {}]   ;;  %s275_s2 = inlined_call_operand.vmem [shape: f32[1,64], index: 2, kind: input, shape index: {}]   ;;  %s276_s3 = inlined_call_operand.vmem [shape: f32[1,64], index: 3, kind: input, shape index: {}]   ;;  %s277_s4 = inlined_call_operand.<no memory space> [shape: f32[1], index: 4, kind: input, shape index: {}]   ;;  %s278_s5 = inlined_call_operand.vmem [shape: f32[8,1], index: 5, kind: output, shape index: {}]  }
   0x1   :  { %s19_s19 = sshll.u32 %s210_s18, 4  ;;  %s186_s22 = scalar_lea.hbm %s274_s1, 512  ;;  %s20_s19 = int_to_ptr.vmem [resolvable:$true] %s19_s19 }
   0x2   :  { %p187_p0 = scmp.ne.s32.totalorder %s274_s1, %s186_s22  ;;  %p190_p1 = scmp.lt.u32.totalorder %s186_s22, %s274_s1 }
   0x4   :  { %p192_p2 = pnand %p190_p1, %p187_p0 }
   0x6   :  { %195 = shalt.err (!%p192_p2)
}
   0x7   :  { %s196_s27 = scalar_lea.vmem %s20_s19, 512  ;;  %p201_p4 = scmp.lt.s32.totalorder %s20_s19, %s20_s19 }
   0x8   :  { %p197_p3 = scmp.ne.s32.totalorder %s20_s19, %s196_s27  ;;  %p202_p5 = scmp.lt.s32.totalorder %s196_s27, %s196_s27 }
   0xa   :  { %p203_p6 = por %p202_p5, %p201_p4 }
   0xc   :  { %p204_p7 = pnand %p203_p6, %p197_p3 }
   0xe   :  { %207 = shalt.err (!%p204_p7)
}
   0xf   :  { %s211_s28 = smov 128   ;;  %s212_s29 = smov 8  }
  0x10   :  { %25 = dma.hbm_to_vmem [thread:$0]  %s274_s1, 512, %s20_s19, [#allocation4], %s211_s28, %s211_s28, %s212_s29  }
  0x11   :  { %208 = dma.done.wait [#allocation4], 512  }
  0x12   :  { %209 = vsyncadd [#allocation4], 4294966784  ;;  %v213_v0 = vmov 0.0|0.0   ;;  %vm214_vm0 = vmmov 0   ;;  %v215_v1 = vmov 0.0   ;;  %v36_v2 = vld [vmem:[#allocation3] sm:$0xff]  ;;  %v135_v17 = vstv %s277_s4 }
  0x13   :  { %170 = vmatprep.subr.bf16.mxu0 %v213_v0  ;;  %167 = vmatprep.mubr.msk.f32.mxu0 %vm214_vm0, %v215_v1  ;;  %v37_v3 = vld [vmem:[#allocation3 + $0x8] sm:$0xff]  ;;  %v38_v4 = vld [vmem:[#allocation3 + $0x10] sm:$0xff]  ;;  %v39_v6 = vld [vmem:[#allocation3 + $0x18] sm:$0xff]  ;;  %vm47_vm1 = vcmask 261120   ;;  %vm130_vm2 = vcmask 523264   ;;  %vm143_vm3 = vcmask 7168  }
  0x14   :  { %v171_v5 = vpack.c.bf16 %v37_v3, %v36_v2  ;;  %v174_v7 = vpack.c.bf16 %v39_v6, %v38_v4  ;;  %v35_v8 = vld [vmem:[%s273_s0] sm:$0xff] }
  0x15   :  { %v150_v9 = vld [vmem:[%s275_s2] ss:$0 sm:$0xff] }
  0x16   :  { %172 = vmatpush3.bf16.msra.mxu0 %v171_v5  ;;  %v152_v13 = vld [vmem:[%s276_s3] ss:$0 sm:$0xff] }
  0x17   :  { %173 = vmatprep.subr.bf16.mxu0 %v213_v0 }
  0x1a   :  { %175 = vmatpush3.bf16.msra.mxu0 %v174_v7 }
  0x1d   :  { %168 = vmatmul.mubr.msk.f32.vlgmr.msra.gmra.mrb[0].mxu0 %vm47_vm1, %v35_v8 }
  0xf0   :  { %v117_v10 = vpop.f32.mrb[0].mxu0 }
  0xf1   :  { %v118_v11 = vadd.f32 %v150_v9, %v117_v10  ;;  %v169_v12 = vpop.f32.mrb[1].mxu0 }
  0xf3   :  { %v121_v14 = vmax.f32 %v118_v11, 0.0 }
  0xf5   :  { %v129_v15 = vmul.f32 %v152_v13, %v121_v14 }
  0xf7   :  { %v131_v16 = vsel %vm130_vm2, %v129_v15, 0.0 }
  0xf8   :  { %132 = vadd.xlane.f32.xlu0 %v131_v16 }
 0x185   :  { %v133_v18 = vpop.xlane.xlu0 %132 }
 0x186   :  { %v136_v19 = vadd.f32 %v135_v17, %v133_v18 }
 0x188   :  { %v153_v20 = vmul.f32 -1.442695, %v136_v19 }
 0x18a   :  { %182 = vpow2.f32 %v153_v20 }
 0x194   :  { %v183_v21 = vpop.eup %182 }
 0x195   :  { %v140_v22 = vadd.f32 1.0, %v183_v21 }
 0x197   :  { %184 = vrcp.f32 %v140_v22 }
 0x1a1   :  { %v185_v23 = vpop.eup %184 }
 0x1a2   :  { %144 = vst.msk [vmem:[%s278_s5] sm:$0xff] %vm143_vm3, %v185_v23 }
 0x1a3   :  { %149 = vsyncpa [#allocation4], 1 }

</bundles_post_ra>
